<compile_context>
chip_gen: v6e
topology: v6e:2x2x1
jax: 0.10.0
libtpu: 0.0.40
codegen_flags: <defaults>
</compile_context>

<pallas_src>
import functools

import jax
import jax.numpy as jnp
from jax.experimental import pallas as pl
from jax.experimental.pallas import tpu as pltpu


_NEG_BIG = -1e30  # finite "masked logit" sentinel (avoids -inf - -inf -> NaN)


def _round_up(x: int, m: int) -> int:
    return (x + m - 1) // m * m


# ---------------------------------------------------------------------------
# Kernel 1: fused row L2-normalization of both projections.
#   1/tau is folded into the z1 (query) operand; outputs are emitted in
#   `compute_dtype` (bf16 by default) so the big matmul uses the fast MXU
#   path with f32 accumulation.
# ---------------------------------------------------------------------------
def _normalize_pair_kernel(x1_ref, x2_ref, o1_ref, o2_ref, *, inv_tau, eps):
    def _norm(x, scale):
        xf = x.astype(jnp.float32)
        ss = jnp.sum(xf * xf, axis=-1, keepdims=True)
        # 1/max(||x||, eps) == rsqrt(max(sumsq, eps^2)); rsqrt rides the EUP.
        inv = jax.lax.rsqrt(jnp.maximum(ss, eps * eps)) * scale
        return xf * inv

    o1_ref[...] = _norm(x1_ref[...], inv_tau).astype(o1_ref.dtype)
    o2_ref[...] = _norm(x2_ref[...], 1.0).astype(o2_ref.dtype)


def _normalize_pair(z1, z2, *, inv_tau, tile, out_dtype, vmem_limit):
    n_pad, d_pad = z1.shape
    spec = pl.BlockSpec((tile, d_pad), lambda i: (i, 0))
    return pl.pallas_call(
        functools.partial(_normalize_pair_kernel,
                          inv_tau=float(inv_tau), eps=1e-8),
        out_shape=(jax.ShapeDtypeStruct((n_pad, d_pad), out_dtype),
                   jax.ShapeDtypeStruct((n_pad, d_pad), out_dtype)),
        grid_spec=pltpu.PrefetchScalarGridSpec(
            num_scalar_prefetch=0,
            grid=(n_pad // tile,),
            in_specs=[spec, spec],
            out_specs=[spec, spec]),
        compiler_params=pltpu.CompilerParams(
            dimension_semantics=("parallel",),
            vmem_limit_bytes=vmem_limit),
    )(z1, z2)


# ---------------------------------------------------------------------------
# Kernel 2: fused bidirectional NT-Xent "cross-entropy" sweep.
#   q: [N_pad, D_pad]  (z1 normalized, 1/tau folded in)
#   k: [N_pad, D_pad]  (z2 normalized)
#   For each (i, j) tile, s = q_i @ k_j.T is computed once and updates:
#     * row online-LSE scratch (reduced over j)   -> loss_row[r] = lse_r - diag
#     * col online-LSE scratch (accumulated over i) -> loss_col[c] = lse_c - diag
# ---------------------------------------------------------------------------
def _fused_nce_kernel(q_ref, k_ref, rbias_ref, cbias_ref,
                      orow_ref, ocol_ref,
                      rm_sc, rl_sc, rd_sc,          # row: max / sum / diag   (tile_m, 1)
                      cm_sc, cl_sc, cd_sc,          # col: max / sum / diag   (nj, 1, tile_n)
                      *, masked):
    i = pl.program_id(0)
    j = pl.program_id(1)
    ni = pl.num_programs(0)
    nj = pl.num_programs(1)
    tile_m = q_ref.shape[0]
    tile_n = k_ref.shape[0]
    ratio = tile_m // tile_n

    # ---- init row accumulators at the start of every row sweep ------------
    @pl.when(j == 0)
    def _():
        rm_sc[...] = jnp.full(rm_sc.shape, -jnp.inf, jnp.float32)
        rl_sc[...] = jnp.zeros(rl_sc.shape, jnp.float32)
        rd_sc[...] = jnp.zeros(rd_sc.shape, jnp.float32)

    # ---- init column accumulators on the first row sweep ------------------
    @pl.when(i == 0)
    def _():
        cm_sc[j] = jnp.full((1, tile_n), -jnp.inf, jnp.float32)
        cl_sc[j] = jnp.zeros((1, tile_n), jnp.float32)
        cd_sc[j] = jnp.zeros((1, tile_n), jnp.float32)

    # MXU: contract over the feature axis, f32 accumulation (bf16 operands).
    s = jax.lax.dot_general(
        q_ref[...], k_ref[...],
        dimension_numbers=(((1,), (1,)), ((), ())),
        preferred_element_type=jnp.float32)          # [tile_m, tile_n] f32

    if masked:  # static: only emitted when the batch needed padding
        # rbias: 0 for valid query rows, -1e30 for padded rows   (tile_m, 1)
        # cbias: 0 for valid key cols,  -1e30 for padded cols    (1, tile_n)
        s = s + rbias_ref[...] + cbias_ref[...]

    # ---- positive-pair (diagonal) logits, extracted from s -----------------
    # The diagonal of sim lives in column tiles with j // ratio == i.
    @pl.when(j // ratio == i)
    def _():
        row_g = i * tile_m + jax.lax.broadcasted_iota(jnp.int32, (tile_m, tile_n), 0)
        col_g = j * tile_n + jax.lax.broadcasted_iota(jnp.int32, (tile_m, tile_n), 1)
        sd = jnp.where(row_g == col_g, s, 0.0)
        rd_sc[...] = rd_sc[...] + jnp.sum(sd, axis=-1, keepdims=True)
        cd_sc[j] = jnp.sum(sd, axis=0, keepdims=True)

    # ---- row-direction (image -> text) online LSE ---------------------------
    rm_prev = rm_sc[...]
    rm_new = jnp.maximum(rm_prev, jnp.max(s, axis=-1, keepdims=True))
    rl_sc[...] = (jnp.exp(rm_prev - rm_new) * rl_sc[...]
                  + jnp.sum(jnp.exp(s - rm_new), axis=-1, keepdims=True))
    rm_sc[...] = rm_new

    # ---- column-direction (text -> image) online LSE ------------------------
    cm_prev = cm_sc[j]
    cm_new = jnp.maximum(cm_prev, jnp.max(s, axis=0, keepdims=True))
    cl_sc[j] = (jnp.exp(cm_prev - cm_new) * cl_sc[j]
                + jnp.sum(jnp.exp(s - cm_new), axis=0, keepdims=True))
    cm_sc[j] = cm_new

    # ---- finalize -----------------------------------------------------------
    @pl.when(j == nj - 1)
    def _():
        orow_ref[...] = (rm_sc[...] + jnp.log(rl_sc[...])) - rd_sc[...]

    @pl.when(i == ni - 1)
    def _():
        ocol_ref[...] = (cm_sc[j] + jnp.log(cl_sc[j])) - cd_sc[j]


def _fused_nce(q, k, rbias, cbias, *, tile_m, tile_n, masked, vmem_limit):
    n_pad, d_pad = q.shape
    ni = n_pad // tile_m
    nj = n_pad // tile_n

    out_row, out_col = pl.pallas_call(
        functools.partial(_fused_nce_kernel, masked=masked),
        out_shape=(jax.ShapeDtypeStruct((n_pad, 1), jnp.float32),
                   jax.ShapeDtypeStruct((1, n_pad), jnp.float32)),
        grid_spec=pltpu.PrefetchScalarGridSpec(
            num_scalar_prefetch=0,
            grid=(ni, nj),
            in_specs=[pl.BlockSpec((tile_m, d_pad), lambda i, j: (i, 0)),
                      pl.BlockSpec((tile_n, d_pad), lambda i, j: (j, 0)),
                      pl.BlockSpec((tile_m, 1), lambda i, j: (i, 0)),
                      pl.BlockSpec((1, tile_n), lambda i, j: (0, j))],
            out_specs=[pl.BlockSpec((tile_m, 1), lambda i, j: (i, 0)),
                       pl.BlockSpec((1, tile_n), lambda i, j: (0, j))],
            scratch_shapes=[pltpu.VMEM((tile_m, 1), jnp.float32),
                            pltpu.VMEM((tile_m, 1), jnp.float32),
                            pltpu.VMEM((tile_m, 1), jnp.float32),
                            pltpu.VMEM((nj, 1, tile_n), jnp.float32),
                            pltpu.VMEM((nj, 1, tile_n), jnp.float32),
                            pltpu.VMEM((nj, 1, tile_n), jnp.float32)]),
        compiler_params=pltpu.CompilerParams(
            # Both axes carry a reduction (row LSE over j, col LSE over i),
            # so neither can be megacore-sharded.
            dimension_semantics=("arbitrary", "arbitrary"),
            vmem_limit_bytes=vmem_limit),
    )(q, k, rbias, cbias)
    return out_row[:, 0], out_col[0, :]


# ---------------------------------------------------------------------------
# Public wrapper == ConVIRTLoss.forward({'z1': z1, 'z2': z2})
# ---------------------------------------------------------------------------
def convirt_loss(z1, z2, tau: float = 0.1, weight: float = 0.75,
                 num_stability: bool = False,
                 tile_m: int | None = None, tile_n: int | None = None,
                 compute_dtype=jnp.bfloat16):
    """ConVIRT / NT-Xent loss.

    The similarity matmul runs with `compute_dtype` operands (bf16 by default,
    f32 accumulation); `num_stability` is accepted for API parity but has no
    numeric effect (the online LSE always stabilizes).
    """
    if weight < 0 or weight > 1:
        raise ValueError("The weight must be between 0 and 1.")
    if z1.ndim != 2 or z1.shape != z2.shape:
        raise ValueError("z1 / z2 must both be [N, D] with matching shapes.")
    del num_stability
    n, d = z1.shape

    # ---- tile selection -----------------------------------------------------
    if tile_n is None:
        tile_n = 256 if n >= 256 else _round_up(n, 16)
    tile_n = int(tile_n)
    n_pad = _round_up(n, tile_n)
    if tile_m is None:
        nb = n_pad // tile_n
        # A taller row tile halves how often the key matrix is re-streamed
        # from HBM; only pick it when it does not add extra batch padding.
        tile_m = 2 * tile_n if (nb >= 2 and nb % 2 == 0) else tile_n
    tile_m = int(tile_m)
    if tile_m % tile_n != 0:
        raise ValueError("tile_m must be a multiple of tile_n.")
    n_pad = _round_up(n, tile_m)
    if n_pad > tile_n and tile_n % 128 != 0:
        raise ValueError("tile_n must be a multiple of 128 (or cover the batch).")
    if n_pad > tile_m and tile_m % 16 != 0:
        raise ValueError("tile_m must be a multiple of 16 (or cover the batch).")
    d_pad = _round_up(d, 128)                 # lane-dense feature axis

    # ---- padding (zeros; padded rows stay zero after normalization) ---------
    if (n_pad, d_pad) != (n, d):
        z1 = jnp.pad(z1, ((0, n_pad - n), (0, d_pad - d)))
        z2 = jnp.pad(z2, ((0, n_pad - n), (0, d_pad - d)))
    masked = n_pad != n

    # ---- VMEM budget from the actual block shapes (v7x-safe cap) ------------
    bpe = jnp.dtype(compute_dtype).itemsize
    nj = n_pad // tile_n
    est = (2 * (tile_m + tile_n) * d_pad * bpe          # double-buffered q / k
           + 4 * (tile_m + tile_n) * 4                  # bias + loss blocks
           + 3 * tile_m * 4 + 3 * nj * 8 * tile_n * 4   # scratch (sublane-padded)
           + 6 * tile_m * tile_n * 4                    # s / exp temporaries
           + (2 << 20))                                 # headroom
    vmem_limit = int(min(48 << 20, max(2 * est, 16 << 20)))

    # ---- normalization tile (must divide n_pad; keep its blocks modest) -----
    in_bpe = jnp.dtype(z1.dtype).itemsize
    norm_tile = tile_m
    while norm_tile > 256 and norm_tile % 2 == 0:
        norm_tile //= 2
    while norm_tile % 32 == 0 and 4 * norm_tile * d_pad * (in_bpe + bpe) > (24 << 20):
        norm_tile //= 2

    q, k = _normalize_pair(z1, z2, inv_tau=1.0 / float(tau), tile=norm_tile,
                           out_dtype=compute_dtype, vmem_limit=vmem_limit)

    # ---- additive padding biases (finite sentinel, tiny inputs) -------------
    if masked:
        valid = jnp.arange(n_pad) < n
        bias = jnp.where(valid, 0.0, _NEG_BIG).astype(jnp.float32)
        rbias = bias[:, None]                 # (n_pad, 1): masks padded rows
        cbias = bias[None, :]                 # (1, n_pad): masks padded cols
    else:
        rbias = jnp.zeros((n_pad, 1), jnp.float32)
        cbias = jnp.zeros((1, n_pad), jnp.float32)

    loss_row, loss_col = _fused_nce(q, k, rbias, cbias,
                                    tile_m=tile_m, tile_n=tile_n,
                                    masked=masked, vmem_limit=vmem_limit)

    loss = (weight * jnp.mean(loss_row[:n])
            + (1.0 - weight) * jnp.mean(loss_col[:n]))
    return loss.astype(jnp.float32)


# ---------------------------------------------------------------------------
# Pure-JAX reference for the sanity check.  `quant_dtype` mimics the kernel's
# bf16 operand quantization so the tight tolerance tests kernel math, not
# bf16 rounding; quant_dtype=None is the full-f32 textbook value.
# ---------------------------------------------------------------------------
def _reference_loss(z1, z2, tau=0.1, weight=0.75, quant_dtype=None):
    z1 = z1.astype(jnp.float32)
    z2 = z2.astype(jnp.float32)
    eps = 1e-8
    inv1 = jax.lax.rsqrt(jnp.maximum(jnp.sum(z1 * z1, -1, keepdims=True), eps * eps))
    inv2 = jax.lax.rsqrt(jnp.maximum(jnp.sum(z2 * z2, -1, keepdims=True), eps * eps))
    q = z1 * (inv1 / tau)
    k = z2 * inv2
    if quant_dtype is not None:
        q = q.astype(quant_dtype)
        k = k.astype(quant_dtype)
    sim = jnp.dot(q, k.T, preferred_element_type=jnp.float32)
    idx = jnp.arange(sim.shape[0])
    lse_r = jax.scipy.special.logsumexp(sim, axis=-1)
    lse_c = jax.scipy.special.logsumexp(sim, axis=0)
    diag = sim[idx, idx]
    return jnp.mean(weight * (lse_r - diag) + (1.0 - weight) * (lse_c - diag))


if __name__ == "__main__":
    key = jax.random.PRNGKey(0)
    ks = jax.random.split(key, 8)

    def check(z1, z2, tau, weight, **kw):
        loss = jax.block_until_ready(
            convirt_loss(z1, z2, tau=tau, weight=weight, **kw))
        ref_q = _reference_loss(z1, z2, tau, weight, quant_dtype=jnp.bfloat16)
        ref_f = _reference_loss(z1, z2, tau, weight)
        assert jnp.isfinite(loss), loss
        assert jnp.allclose(loss, ref_q, rtol=1e-3, atol=1e-3), (loss, ref_q)
        assert jnp.allclose(loss, ref_f, rtol=5e-2, atol=5e-2), (loss, ref_f)

    # Case 1: tiny aligned batch (single fused block).
    z1 = jax.random.normal(ks[0], (8, 32), dtype=jnp.float32)    # image proj
    z2 = jax.random.normal(ks[1], (8, 32), dtype=jnp.float32)    # text proj
    check(z1, z2, 0.1, 0.75)

    # Case 2: non-aligned shapes exercise batch/feature padding + masking.
    z1 = jax.random.normal(ks[2], (12, 48), dtype=jnp.float32)
    z2 = jax.random.normal(ks[3], (12, 48), dtype=jnp.float32)
    check(z1, z2, 0.1, 0.6, num_stability=True)

    # Case 3: multi-tile grid with masking (fused row + column online-LSE).
    z1 = jax.random.normal(ks[4], (200, 96), dtype=jnp.float32)
    z2 = jax.random.normal(ks[5], (200, 96), dtype=jnp.float32)
    check(z1, z2, 0.07, 0.5, tile_m=128, tile_n=128)

    # Case 4: rectangular tiles (tile_m = 2 * tile_n), no padding.
    z1 = jax.random.normal(ks[6], (256, 160), dtype=jnp.float32)
    z2 = jax.random.normal(ks[7], (256, 160), dtype=jnp.float32)
    check(z1, z2, 0.2, 0.25, tile_m=256, tile_n=128)

    print("KERNEL_OK")
</pallas_src>

<mosaic_0001>
module attributes {stable_mosaic.version = 11 : i64} {
  func.func @_normalize_pair_kernel(%arg0: i32, %arg1: memref<16x128xf32, #tpu.memory_space<vmem>>, %arg2: memref<16x128xf32, #tpu.memory_space<vmem>>, %arg3: memref<16x128xbf16, #tpu.memory_space<vmem>>, %arg4: memref<16x128xbf16, #tpu.memory_space<vmem>>) attributes {dimension_semantics = [#tpu.dimension_semantics<parallel>], iteration_bounds = array<i64: 1>, scalar_prefetch = 0 : i64, scratch_operands = 0 : i64, tpu.core_type = #tpu.core_type<tc>, window_params = [{transform_indices = @transform_0, window_bounds = array<i64: 16, 128>}, {transform_indices = @transform_1, window_bounds = array<i64: 16, 128>}, {transform_indices = @transform_2, window_bounds = array<i64: 16, 128>}, {transform_indices = @transform_3, window_bounds = array<i64: 16, 128>}]} {
    %c0 = arith.constant 0 : index
    %c0_0 = arith.constant 0 : index
    %0 = vector.load %arg1[%c0, %c0_0] : memref<16x128xf32, #tpu.memory_space<vmem>>, vector<16x128xf32>
    %1 = arith.mulf %0, %0 : vector<16x128xf32>
    %cst = arith.constant dense<0.000000e+00> : vector<16xf32>
    %2 = vector.multi_reduction <add>, %1, %cst [1] : vector<16x128xf32> to vector<16xf32>
    %3 = vector.shape_cast %2 : vector<16xf32> to vector<16x1xf32>
    %cst_1 = arith.constant 1.000000e-16 : f32
    %4 = vector.broadcast %cst_1 : f32 to vector<16x1xf32>
    %5 = arith.maximumf %3, %4 : vector<16x1xf32>
    %6 = math.rsqrt %5 : vector<16x1xf32>
    %cst_2 = arith.constant 1.000000e+01 : f32
    %7 = vector.broadcast %cst_2 : f32 to vector<16x1xf32>
    %8 = arith.mulf %6, %7 : vector<16x1xf32>
    %9 = vector.broadcast %8 : vector<16x1xf32> to vector<16x128xf32>
    %10 = arith.mulf %0, %9 : vector<16x128xf32>
    %11 = arith.truncf %10 : vector<16x128xf32> to vector<16x128xbf16>
    %c0_3 = arith.constant 0 : index
    %c0_4 = arith.constant 0 : index
    %12 = vector.load %arg3[%c0_3, %c0_4] : memref<16x128xbf16, #tpu.memory_space<vmem>>, vector<16x128xbf16>
    tpu.vector_store %arg3[%c0_3, %c0_4], %11 {strides = array<i32>} : memref<16x128xbf16, #tpu.memory_space<vmem>>, vector<16x128xbf16>,
    %c0_5 = arith.constant 0 : index
    %c0_6 = arith.constant 0 : index
    %13 = vector.load %arg2[%c0_5, %c0_6] : memref<16x128xf32, #tpu.memory_space<vmem>>, vector<16x128xf32>
    %14 = arith.mulf %13, %13 : vector<16x128xf32>
    %cst_7 = arith.constant dense<0.000000e+00> : vector<16xf32>
    %15 = vector.multi_reduction <add>, %14, %cst_7 [1] : vector<16x128xf32> to vector<16xf32>
    %16 = vector.shape_cast %15 : vector<16xf32> to vector<16x1xf32>
    %cst_8 = arith.constant 1.000000e-16 : f32
    %17 = vector.broadcast %cst_8 : f32 to vector<16x1xf32>
    %18 = arith.maximumf %16, %17 : vector<16x1xf32>
    %19 = math.rsqrt %18 : vector<16x1xf32>
    %cst_9 = arith.constant 1.000000e+00 : f32
    %20 = vector.broadcast %cst_9 : f32 to vector<16x1xf32>
    %21 = arith.mulf %19, %20 : vector<16x1xf32>
    %22 = vector.broadcast %21 : vector<16x1xf32> to vector<16x128xf32>
    %23 = arith.mulf %13, %22 : vector<16x128xf32>
    %24 = arith.truncf %23 : vector<16x128xf32> to vector<16x128xbf16>
    %c0_10 = arith.constant 0 : index
    %c0_11 = arith.constant 0 : index
    %25 = vector.load %arg4[%c0_10, %c0_11] : memref<16x128xbf16, #tpu.memory_space<vmem>>, vector<16x128xbf16>
    tpu.vector_store %arg4[%c0_10, %c0_11], %24 {strides = array<i32>} : memref<16x128xbf16, #tpu.memory_space<vmem>>, vector<16x128xbf16>,
    return
  }
  func.func @transform_0(%arg0: i32) -> (i32, i32) {
    %c0_i32 = arith.constant 0 : i32
    %c0_i32_0 = arith.constant 0 : i32
    return %arg0, %c0_i32 : i32, i32
  }
  func.func @transform_1(%arg0: i32) -> (i32, i32) {
    %c0_i32 = arith.constant 0 : i32
    %c0_i32_0 = arith.constant 0 : i32
    return %arg0, %c0_i32 : i32, i32
  }
  func.func @transform_2(%arg0: i32) -> (i32, i32) {
    %c0_i32 = arith.constant 0 : i32
    %c0_i32_0 = arith.constant 0 : i32
    return %arg0, %c0_i32 : i32, i32
  }
  func.func @transform_3(%arg0: i32) -> (i32, i32) {
    %c0_i32 = arith.constant 0 : i32
    %c0_i32_0 = arith.constant 0 : i32
    return %arg0, %c0_i32 : i32, i32
  }
}

</mosaic_0001>

<bundles_post_ra>
// kernel: tpu_custom_call.1
= control target key start
LH: loop header
LB: loop body
LE: loop exit
PB: predicated region body
PF: predicated region fallthrough
CT: control target
= control target key end

     0   :  { %9 = vsyncpa [#allocation3], 0  ;;  %s289_s0 = inlined_call_operand.hbm [shape: f32[16,128], index: 0, kind: input, shape index: {}]   ;;  %s290_s1 = inlined_call_operand.hbm [shape: f32[16,128], index: 1, kind: input, shape index: {}]   ;;  %s291_s2 = inlined_call_operand.hbm [shape: bf16[16,128], index: 2, kind: output, shape index: {0}]   ;;  %s292_s3 = inlined_call_operand.hbm [shape: bf16[16,128], index: 3, kind: output, shape index: {1}]  }
   0x1   :  { %10 = vsyncpa [#allocation6], 0 }
   0x2   :  { %11 = vsyncpa [#allocation4], 0 }
   0x3   :  { %12 = vsyncpa [#allocation9], 0  ;;  %s249_s12 = smov [#allocation2]  }
   0x4   :  { %s18_s13 = sshll.u32 %s249_s12, 4  ;;  %s19_s13 = int_to_ptr.vmem [resolvable:$true] %s18_s13 }
   0x5   :  { %s169_s14 = scalar_lea.vmem %s19_s13, 256  ;;  %p174_p1 = scmp.lt.s32.totalorder %s19_s13, %s19_s13 }
   0x6   :  { %p170_p0 = scmp.ne.s32.totalorder %s19_s13, %s169_s14  ;;  %p175_p2 = scmp.lt.s32.totalorder %s169_s14, %s169_s14 }
   0x8   :  { %p176_p3 = por %p175_p2, %p174_p1 }
   0xa   :  { %p177_p4 = pnand %p176_p3, %p170_p0 }
   0xc   :  { %180 = shalt.err (!%p177_p4)
}
   0xd   :  { %s250_s15 = smov 128   ;;  %s251_s16 = smov 8  }
   0xe   :  { %24 = dma.hbm_to_vmem [thread:$0]  %s289_s0, 256, %s19_s13, [#allocation3], %s250_s15, %s250_s15, %s251_s16  }
   0xf   :  { %s252_s19 = smov [#allocation5]  }
  0x10   :  { %s30_s20 = sshll.u32 %s252_s19, 4  ;;  %s31_s20 = int_to_ptr.vmem [resolvable:$true] %s30_s20 }
  0x11   :  { %s189_s21 = scalar_lea.vmem %s31_s20, 256  ;;  %p194_p6 = scmp.lt.s32.totalorder %s31_s20, %s31_s20 }
  0x12   :  { %p190_p5 = scmp.ne.s32.totalorder %s31_s20, %s189_s21  ;;  %p195_p7 = scmp.lt.s32.totalorder %s189_s21, %s189_s21 }
  0x14   :  { %p196_p8 = por %p195_p7, %p194_p6 }
  0x16   :  { %p197_p9 = pnand %p196_p8, %p190_p5 }
  0x18   :  { %200 = shalt.err (!%p197_p9)
}
  0x19   :  { %36 = dma.hbm_to_vmem [thread:$0]  %s290_s1, 256, %s31_s20, [#allocation6], %s250_s15, %s250_s15, %s251_s16  }
  0x1a   :  { %241 = dma.done.wait [#allocation3], 256  }
  0x1b   :  { %242 = vsyncadd [#allocation3], 4294967040 }
  0x1c   :  { %243 = dma.done.wait [#allocation6], 256  }
  0x1d   :  { %244 = vsyncadd [#allocation6], 4294967040  ;;  %v69_v0 = vld [vmem:[#allocation5] sm:$0xff]  ;;  %v43_v1 = vld [vmem:[#allocation2] sm:$0xff]  ;;  %s253_s0 = smov [#allocation8]   ;;  %s254_s24 = smov [#allocation7]  }
  0x1e   :  { %v70_v2 = vld [vmem:[#allocation5 + $0x8] sm:$0xff]  ;;  %v71_v3 = vmul.f32 %v69_v0, %v69_v0  ;;  %v45_v4 = vmul.f32 %v43_v1, %v43_v1  ;;  %v44_v5 = vld [vmem:[#allocation2 + $0x8] sm:$0xff]  ;;  %s110_s1 = sshll.u32 %s253_s0, 4  ;;  %s98_s25 = sshll.u32 %s254_s24, 4  ;;  %s111_s1 = int_to_ptr.vmem [resolvable:$true] %s110_s1  ;;  %s99_s25 = int_to_ptr.vmem [resolvable:$true] %s98_s25 }
  0x1f   :  { %v72_v6 = vmul.f32 %v70_v2, %v70_v2  ;;  %v46_v7 = vmul.f32 %v44_v5, %v44_v5  ;;  %s201_s26 = scalar_lea.vmem %s111_s1, 128  ;;  %p206_p11 = scmp.lt.s32.totalorder %s111_s1, %s111_s1 }
  0x20   :  { %73 = vadd.xlane.f32.xlu1 %v71_v3  ;;  %47 = vadd.xlane.f32.xlu0 %v45_v4  ;;  %p202_p10 = scmp.ne.s32.totalorder %s111_s1, %s201_s26  ;;  %p207_p12 = scmp.lt.s32.totalorder %s201_s26, %s201_s26 }
  0x22   :  { %p208_p13 = por %p207_p12, %p206_p11 }
  0x24   :  { %75 = vadd.xlane.f32.xlu1 %v72_v6  ;;  %49 = vadd.xlane.f32.xlu0 %v46_v7  ;;  %p209_p0 = pnand %p208_p13, %p202_p10 }
  0xa9   :  { %v74_v8 = vpop.xlane.xlu1 %73  ;;  %v48_v9 = vpop.xlane.xlu0 %47 }
  0xaa   :  { %v77_v10 = vmax.f32 %v74_v8, 1e-16  ;;  %v51_v11 = vmax.f32 %v48_v9, 1e-16 }
  0xac   :  { %153 = vrsqrt.f32 %v51_v11 }
  0xad   :  { %v76_v12 = vpop.xlane.xlu1 %75  ;;  %v50_v13 = vpop.xlane.xlu0 %49  ;;  %155 = vrsqrt.f32 %v77_v10 }
  0xae   :  { %v78_v14 = vmax.f32 %v76_v12, 1e-16  ;;  %v52_v15 = vmax.f32 %v50_v13, 1e-16 }
  0xb0   :  { %157 = vrsqrt.f32 %v78_v14 }
  0xb1   :  { %159 = vrsqrt.f32 %v52_v15 }
  0xb9   :  { %v154_v16 = vpop.eup %153 }
  0xba   :  { %v156_v17 = vpop.eup %155  ;;  %v55_v19 = vmul.f32 10.0, %v154_v16 }
  0xbb   :  { %v81_v21 = vmul.f32 %v156_v17, %v69_v0 }
  0xbc   :  { %v57_v25 = vmul.f32 %v55_v19, %v43_v1 }
  0xbd   :  { %v158_v18 = vpop.eup %157 }
  0xbe   :  { %v160_v20 = vpop.eup %159  ;;  %v82_v22 = vmul.f32 %v158_v18, %v70_v2 }
  0xbf   :  { %v56_v23 = vmul.f32 10.0, %v160_v20 }
  0xc0   :  { %v143_v24 = vpack.c.bf16 %v82_v22, %v81_v21 }
  0xc1   :  { %v58_v26 = vmul.f32 %v56_v23, %v44_v5 }
  0xc2   :  { %144 = vst [vmem:[#allocation8] sm:$0xff] %v143_v24  }
  0xc3   :  { %v138_v27 = vpack.c.bf16 %v58_v26, %v57_v25 }
  0xc4   :  { %212 = shalt.err (!%p209_p0)
}
  0xc5   :  { %s255_s27 = smov 64   ;;  %s256_s28 = smov 4   ;;  %139 = vst [vmem:[#allocation7] sm:$0xff] %v138_v27  }
  0xc6   :  { %116 = dma.vmem_to_hbm [thread:$0]  %s111_s1, 128, %s292_s3, [#allocation9], %s255_s27, %s255_s27, %s256_s28  }
  0xc7   :  { %s221_s4 = scalar_lea.vmem %s99_s25, 128  ;;  %p226_p2 = scmp.lt.s32.totalorder %s99_s25, %s99_s25 }
  0xc8   :  { %p222_p1 = scmp.ne.s32.totalorder %s99_s25, %s221_s4  ;;  %p227_p3 = scmp.lt.s32.totalorder %s221_s4, %s221_s4 }
  0xca   :  { %p228_p4 = por %p227_p3, %p226_p2 }
  0xcc   :  { %p229_p5 = pnand %p228_p4, %p222_p1 }
  0xce   :  { %232 = shalt.err (!%p229_p5)
}
  0xcf   :  { %104 = dma.vmem_to_hbm [thread:$0]  %s99_s25, 128, %s291_s2, [#allocation4], %s255_s27, %s255_s27, %s256_s28  }
  0xd0   :  { %245 = dma.done.wait [#allocation4], 128  }
  0xd1   :  { %246 = vsyncadd [#allocation4], 4294967168 }
  0xd2   :  { %247 = dma.done.wait [#allocation9], 128  }
  0xd3   :  { %248 = vsyncadd [#allocation9], 4294967168 }
  0xd4   :  { %123 = vsyncpa [#allocation3], 1 }
  0xd5   :  { %124 = vsyncpa [#allocation6], 1 }
  0xd6   :  { %125 = vsyncpa [#allocation4], 1 }
  0xd7   :  { %126 = vsyncpa [#allocation9], 1 }

</bundles_post_ra>
